<compile_context>
chip_gen: v6e
topology: v6e:2x2x1
jax: 0.10.0
libtpu: 0.0.40
codegen_flags: <defaults>
</compile_context>

<pallas_src>
import functools

import jax
import jax.numpy as jnp
from jax import lax
from jax.experimental import pallas as pl
from jax.experimental.pallas import tpu as pltpu


def _cnn_kernel(tok_ref, table_ref, aux_ref, out_ref, *, fs1, fs2):
    BS = tok_ref.shape[0]                       # B * S (batch-major, seq fastest)
    V = table_ref.shape[0]                      # vocab size
    B = out_ref.shape[0]
    S = BS // B
    two_f = aux_ref.shape[1]                    # 2 * n_filters == embedding_dim
    F = two_f // 2
    max_fs = max(fs1, fs2)
    L1 = S - fs1 + 1                            # valid conv1 window positions
    L2 = S - fs2 + 1                            # valid conv2 window positions

    # ---- fused embedding gather + BOTH convs: one bf16 one-hot matmul against
    #      the host-folded (vocab @ W_tap) table.  g[r, k*2F+f] is the tap-k
    #      contribution of token r to filter f (conv1 lanes [0:F], conv2 [F:2F]).
    toks = tok_ref[...]                                                   # (BS, 1) i32
    one_hot = (toks == lax.broadcasted_iota(jnp.int32, (BS, V), 1))
    g = jnp.dot(one_hot.astype(jnp.bfloat16), table_ref[...],
                preferred_element_type=jnp.float32)                      # (BS, max_fs*2F) f32

    # ---- per-tap shifted accumulation (VPU adds on static slices).  A cheap,
    #      sublane-aligned wrap extension replaces host-side token padding:
    #      wrapped rows only reach window positions masked below, or folded
    #      weight columns that are exactly zero.
    if max_fs > 1:
        ext = ((max_fs - 1 + 7) // 8) * 8
        g_ext = jnp.concatenate([g, g[0:ext, :]], axis=0)                 # (BS+ext, .)
    else:
        g_ext = g
    acc = g[:, 0:two_f]
    for k in range(1, max_fs):
        acc = acc + g_ext[k:k + BS, k * two_f:(k + 1) * two_f]
    # acc lanes [0:F] = conv1 pre-activations, [F:2F] = conv2 pre-activations.

    # ---- max over valid time positions (conv1 uses L1, conv2 uses L2) ----
    c = acc.reshape(B, S, two_f)
    pos = lax.broadcasted_iota(jnp.int32, (B, S, two_f), 1)
    lane = lax.broadcasted_iota(jnp.int32, (B, S, two_f), 2)
    valid = pos < jnp.where(lane < F, L1, L2)
    m = jnp.max(jnp.where(valid, c, -jnp.inf), axis=1)                    # (B, 2F)

    # ---- bias + ReLU hoisted past the max (monotone), then fc1 + sigmoid ----
    m = jnp.maximum(m + aux_ref[0:1, :], 0.0)                             # (B, 2F)
    logit = jnp.sum(m * aux_ref[1:2, :], axis=1, keepdims=True)           # (B, 1)
    logit = logit + aux_ref[2:3, 0:1]
    out_ref[...] = jax.nn.sigmoid(logit)


def prepare_params(vocab_vectors, conv1_w, conv1_b, conv2_w, conv2_b, fc_w, fc_b):
    """Fold torch-layout parameters into the kernel layouts (host-side, once).

    conv*_w : (F, 1, fs, D)  like nn.Conv2d(1, F, (fs, D)).weight
    conv*_b : (F,)
    fc_w    : (1, D)         like nn.Linear(D, 1).weight  (requires D == 2*F)
    fc_b    : (1,)
    """
    F, _, fs1, D = conv1_w.shape
    F2, _, fs2, D2 = conv2_w.shape
    assert (F, D) == (F2, D2), "both convs must share n_filters / embedding_dim"
    assert fc_w.shape == (1, 2 * F) and 2 * F == D, (
        "fc1 = Linear(embedding_dim, 1) consumes cat([pool1, pool2]); "
        "requires 2 * n_filters == embedding_dim")
    V = vocab_vectors.shape[0]
    max_fs = max(fs1, fs2)
    vocab = vocab_vectors.astype(jnp.float32)

    # Per-tap folded tables: t*[k, v, f] = sum_d vocab[v, d] * conv_w[f, 0, k, d].
    t1 = jnp.einsum("vd,fkd->kvf", vocab, conv1_w[:, 0].astype(jnp.float32))
    t2 = jnp.einsum("vd,fkd->kvf", vocab, conv2_w[:, 0].astype(jnp.float32))
    zeros = jnp.zeros((V, F), jnp.float32)
    blocks = []
    for k in range(max_fs):
        blocks.append(t1[k] if k < fs1 else zeros)   # conv1 lanes of tap k
        blocks.append(t2[k] if k < fs2 else zeros)   # conv2 lanes of tap k
    table = jnp.concatenate(blocks, axis=1).astype(jnp.bfloat16)   # (V, max_fs*2F)

    # Pack all tiny f32 params into one (8, 2F) array: row0 = [b1|b2],
    # row1 = fc weight (cat order matches torch: [pool1 | pool2]), row2[0] = fc bias.
    aux = jnp.zeros((8, 2 * F), jnp.float32)
    aux = aux.at[0, :F].set(conv1_b.astype(jnp.float32))
    aux = aux.at[0, F:].set(conv2_b.astype(jnp.float32))
    aux = aux.at[1, :].set(fc_w[0].astype(jnp.float32))
    aux = aux.at[2, 0].set(fc_b.astype(jnp.float32)[0])
    return {"table": table, "aux": aux}


@functools.partial(jax.jit, static_argnames="filter_sizes")
def cnn_forward(x_tokens, params, filter_sizes):
    """x_tokens: (S, B) int token ids, seq-first like the torch module."""
    fs1, fs2 = filter_sizes
    S, B = x_tokens.shape
    # permute(1, 0, 2) folded into one cheap int32 reorder (no padding needed;
    # the kernel wrap-extends internally).
    toks = jnp.transpose(x_tokens).reshape(B * S, 1).astype(jnp.int32)

    vspec = pl.BlockSpec(memory_space=pltpu.MemorySpace.VMEM)
    out = pl.pallas_call(
        functools.partial(_cnn_kernel, fs1=fs1, fs2=fs2),
        out_shape=jax.ShapeDtypeStruct((B, 1), jnp.float32),
        in_specs=[vspec, vspec, vspec],
        out_specs=vspec,
    )(toks, params["table"], params["aux"])
    return out                                   # (B, 1), matching torch for B > 1


def _reference_forward(x_tokens, vocab, c1w, c1b, c2w, c2b, fcw, fcb):
    """Pure-JAX f32 mirror of the torch module (for a sanity check)."""
    emb = vocab[x_tokens]                         # (S, B, D)
    xbsd = jnp.transpose(emb, (1, 0, 2))          # (B, S, D)

    def conv_relu_pool(w, b):                     # w: (F, 1, fs, D)
        fs = w.shape[2]
        outs = []
        for p in range(xbsd.shape[1] - fs + 1):
            win = xbsd[:, p:p + fs, :]                                  # (B, fs, D)
            outs.append(jnp.einsum("bkd,fkd->bf", win, w[:, 0]) + b)
        c = jnp.maximum(jnp.stack(outs, axis=2), 0.0)                   # (B, F, L)
        return jnp.max(c, axis=2)                                       # (B, F)

    m1 = conv_relu_pool(c1w, c1b)
    m2 = conv_relu_pool(c2w, c2b)
    logit = jnp.concatenate([m1, m2], axis=1) @ fcw.T + fcb             # (B, 1)
    return jax.nn.sigmoid(logit)


if __name__ == "__main__":
    # Small, self-consistent shapes implied by the module:
    #   Linear(embedding_dim, 1) consumes cat of two max-pooled conv outputs,
    #   so 2 * n_filters must equal embedding_dim.
    vocab_size = 50
    embedding_dim = 32
    n_filters = 16                      # 2 * n_filters == embedding_dim
    filter_sizes = (3, 4)
    seq_len, batch = 16, 2

    key = jax.random.PRNGKey(0)
    ks = jax.random.split(key, 8)
    vocab_vectors = jax.random.normal(ks[0], (vocab_size, embedding_dim), jnp.float32)
    # torch-layout parameters
    conv1_w = 0.1 * jax.random.normal(ks[1], (n_filters, 1, filter_sizes[0], embedding_dim), jnp.float32)
    conv1_b = 0.1 * jax.random.normal(ks[2], (n_filters,), jnp.float32)
    conv2_w = 0.1 * jax.random.normal(ks[3], (n_filters, 1, filter_sizes[1], embedding_dim), jnp.float32)
    conv2_b = 0.1 * jax.random.normal(ks[4], (n_filters,), jnp.float32)
    fc_w = 0.1 * jax.random.normal(ks[5], (1, embedding_dim), jnp.float32)
    fc_b = 0.1 * jax.random.normal(ks[6], (1,), jnp.float32)

    params = prepare_params(vocab_vectors, conv1_w, conv1_b, conv2_w, conv2_b, fc_w, fc_b)
    x = jax.random.randint(ks[7], (seq_len, batch), 0, vocab_size, jnp.int32)

    out = cnn_forward(x, params, filter_sizes=filter_sizes)
    jax.block_until_ready(out)
    assert out.shape == (batch, 1) and out.dtype == jnp.float32

    # Correctness check against a pure-JAX f32 mirror of the torch module
    # (bf16 folded table -> small, bounded deviation).
    ref = _reference_forward(x, vocab_vectors, conv1_w, conv1_b, conv2_w, conv2_b, fc_w, fc_b)
    max_err = float(jnp.max(jnp.abs(out - ref)))
    assert max_err < 3e-2, f"mismatch vs reference: max abs err {max_err}"

    print("KERNEL_OK")
</pallas_src>

<mosaic_0001>
module attributes {stable_mosaic.version = 11 : i64} {
  func.func @_cnn_kernel(%arg0: memref<32x1xi32, #tpu.memory_space<vmem>>, %arg1: memref<50x128xbf16, #tpu.memory_space<vmem>>, %arg2: memref<8x32xf32, #tpu.memory_space<vmem>>, %arg3: memref<2x1xf32, #tpu.memory_space<vmem>>) attributes {dimension_semantics = [], scalar_prefetch = 0 : i64, scratch_operands = 0 : i64, tpu.core_type = #tpu.core_type<tc>} {
    %c0 = arith.constant 0 : index
    %c0_0 = arith.constant 0 : index
    %0 = vector.load %arg0[%c0, %c0_0] : memref<32x1xi32, #tpu.memory_space<vmem>>, vector<32x1xi32>
    %1 = tpu.iota {dimensions = array<i32: 1>} : vector<32x50xi32>
    %2 = vector.broadcast %0 : vector<32x1xi32> to vector<32x50xi32>
    %3 = arith.cmpi eq, %2, %1 : vector<32x50xi32>
    %4 = arith.extui %3 : vector<32x50xi1> to vector<32x50xi32>
    %5 = arith.sitofp %4 : vector<32x50xi32> to vector<32x50xf32>
    %6 = arith.truncf %5 : vector<32x50xf32> to vector<32x50xbf16>
    %c0_1 = arith.constant 0 : index
    %c0_2 = arith.constant 0 : index
    %7 = vector.load %arg1[%c0_1, %c0_2] : memref<50x128xbf16, #tpu.memory_space<vmem>>, vector<50x128xbf16>
    %cst = arith.constant dense<0.000000e+00> : vector<32x128xf32>
    %8 = tpu.matmul %6, %7, %cst {dimension_numbers = #tpu.dot_dimension_numbers<[1], [0], [0], [1], [0, 0, 1, 1], [], []>} : vector<32x50xbf16>, vector<50x128xbf16>, vector<32x128xf32> -> vector<32x128xf32>
    %9 = vector.extract_strided_slice %8 {offsets = [0, 0], sizes = [8, 128], strides = [1, 1]} : vector<32x128xf32> to vector<8x128xf32>
    %10 = tpu.concatenate %8, %9 in 0 : vector<32x128xf32>, vector<8x128xf32> -> vector<40x128xf32>
    %11 = vector.extract_strided_slice %8 {offsets = [0, 0], sizes = [32, 32], strides = [1, 1]} : vector<32x128xf32> to vector<32x32xf32>
    %12 = vector.extract_strided_slice %10 {offsets = [1, 32], sizes = [32, 32], strides = [1, 1]} : vector<40x128xf32> to vector<32x32xf32>
    %13 = arith.addf %11, %12 : vector<32x32xf32>
    %14 = vector.extract_strided_slice %10 {offsets = [2, 64], sizes = [32, 32], strides = [1, 1]} : vector<40x128xf32> to vector<32x32xf32>
    %15 = arith.addf %13, %14 : vector<32x32xf32>
    %16 = vector.extract_strided_slice %10 {offsets = [3, 96], sizes = [32, 32], strides = [1, 1]} : vector<40x128xf32> to vector<32x32xf32>
    %17 = arith.addf %15, %16 : vector<32x32xf32>
    %18 = vector.shape_cast %17 : vector<32x32xf32> to vector<2x16x32xf32>
    %19 = tpu.iota {dimensions = array<i32: 1>} : vector<2x16x32xi32>
    %20 = tpu.iota {dimensions = array<i32: 2>} : vector<2x16x32xi32>
    %c16_i32 = arith.constant 16 : i32
    %21 = vector.broadcast %c16_i32 : i32 to vector<2x16x32xi32>
    %22 = arith.cmpi slt, %20, %21 : vector<2x16x32xi32>
    %c14_i32 = arith.constant 14 : i32
    %c13_i32 = arith.constant 13 : i32
    %23 = vector.broadcast %c14_i32 : i32 to vector<2x16x32xi32>
    %24 = vector.broadcast %c13_i32 : i32 to vector<2x16x32xi32>
    %25 = arith.select %22, %23, %24 : vector<2x16x32xi1>, vector<2x16x32xi32>
    %26 = arith.cmpi slt, %19, %25 : vector<2x16x32xi32>
    %cst_3 = arith.constant 0xFF800000 : f32
    %27 = vector.broadcast %cst_3 : f32 to vector<2x16x32xf32>
    %28 = arith.select %26, %18, %27 : vector<2x16x32xi1>, vector<2x16x32xf32>
    %cst_4 = arith.constant dense<0xFF800000> : vector<2x32xf32>
    %29 = vector.multi_reduction <maximumf>, %28, %cst_4 [1] : vector<2x16x32xf32> to vector<2x32xf32>
    %c0_5 = arith.constant 0 : index
    %c0_6 = arith.constant 0 : index
    %30 = vector.load %arg2[%c0_5, %c0_6] : memref<8x32xf32, #tpu.memory_space<vmem>>, vector<1x32xf32>
    %31 = vector.broadcast %30 : vector<1x32xf32> to vector<2x32xf32>
    %32 = arith.addf %29, %31 : vector<2x32xf32>
    %cst_7 = arith.constant 0.000000e+00 : f32
    %33 = vector.broadcast %cst_7 : f32 to vector<2x32xf32>
    %34 = arith.maximumf %32, %33 : vector<2x32xf32>
    %c1 = arith.constant 1 : index
    %c0_8 = arith.constant 0 : index
    %35 = vector.load %arg2[%c1, %c0_8] : memref<8x32xf32, #tpu.memory_space<vmem>>, vector<1x32xf32>
    %36 = vector.broadcast %35 : vector<1x32xf32> to vector<2x32xf32>
    %37 = arith.mulf %34, %36 : vector<2x32xf32>
    %cst_9 = arith.constant dense<0.000000e+00> : vector<2xf32>
    %38 = vector.multi_reduction <add>, %37, %cst_9 [1] : vector<2x32xf32> to vector<2xf32>
    %39 = vector.shape_cast %38 : vector<2xf32> to vector<2x1xf32>
    %c2 = arith.constant 2 : index
    %c0_10 = arith.constant 0 : index
    %40 = vector.load %arg2[%c2, %c0_10] : memref<8x32xf32, #tpu.memory_space<vmem>>, vector<1x1xf32>
    %41 = vector.broadcast %40 : vector<1x1xf32> to vector<2x1xf32>
    %42 = arith.addf %39, %41 : vector<2x1xf32>
    %43 = arith.negf %42 : vector<2x1xf32>
    %44 = math.exp %43 : vector<2x1xf32>
    %cst_11 = arith.constant 1.000000e+00 : f32
    %45 = vector.broadcast %cst_11 : f32 to vector<2x1xf32>
    %46 = arith.addf %45, %44 : vector<2x1xf32>
    %47 = arith.divf %45, %46 : vector<2x1xf32>
    %c0_12 = arith.constant 0 : index
    %c0_13 = arith.constant 0 : index
    %48 = vector.load %arg3[%c0_12, %c0_13] : memref<2x1xf32, #tpu.memory_space<vmem>>, vector<2x1xf32>
    tpu.vector_store %arg3[%c0_12, %c0_13], %47 {strides = array<i32>} : memref<2x1xf32, #tpu.memory_space<vmem>>, vector<2x1xf32>,
    return
  }
}

</mosaic_0001>

<bundles_post_ra>
// kernel: cnn_forward.1
= control target key start
LH: loop header
LB: loop body
LE: loop exit
PB: predicated region body
PF: predicated region fallthrough
CT: control target
= control target key end

     0   :  { %v337_v0 = vmov 0   ;;  %vm82_vm0 = vcmask 1040384   ;;  %v19_v10 = vlaneseq  ;;  %vm75_vm5 = vcmask 408576   ;;  %s340_s27 = smov 64   ;;  %s341_s28 = smov 32   ;;  %s428_s0 = inlined_call_operand.vmem [shape: s32[32,1], index: 0, kind: input, shape index: {}]   ;;  %s429_s1 = inlined_call_operand.vmem [shape: bf16[50,128], index: 1, kind: input, shape index: {}]   ;;  %s430_s2 = inlined_call_operand.vmem [shape: f32[8,32], index: 2, kind: input, shape index: {}]   ;;  %s431_s3 = inlined_call_operand.vmem [shape: f32[2,1], index: 3, kind: output, shape index: {}]  }
   0x1   :  { %328 = vset.pattern.permute.xlu1 %v337_v0  ;;  %327 = vset.pattern.permute.xlu0 %v337_v0  ;;  %v17_v1 = vld [vmem:[%s428_s0 + $0x10] sm:$0xff]  ;;  %v15_v2 = vld [vmem:[%s428_s0] sm:$0xff]  ;;  %v18_v3 = vld [vmem:[%s428_s0 + $0x18] sm:$0xff]  ;;  %v338_v16 = vmov 0.0   ;;  %vm139_vm6 = vcmask 1046528   ;;  %vm164_vm7 = vcmask 1045504  }
   0x2   :  { %28 = vperm.xlu1 %328, %v17_v1   ;;  %22 = vperm.xlu0 %327, %v15_v2   ;;  %v16_v4 = vld [vmem:[%s428_s0 + $0x8] sm:$0xff]  ;;  %v329_v5 = vld [vmem:[%s429_s1 + $0x18] ss:$0 sps:$4 sm:$0x11]   ;;  %v330_v6 = vld [vmem:[%s429_s1 + $0x10] sm:$0xff]   ;;  %v388_v11 = vand.u32 127, %v19_v10 }
   0x3   :  { %320 = vmatprep.subr.msk.bf16.mxu0 %vm82_vm0, %v329_v5  ;;  %v84_v7 = vsel %vm82_vm0, %v329_v5, 0  ;;  %v331_v8 = vld [vmem:[%s429_s1 + $0x8] sm:$0xff]   ;;  %v332_v9 = vld [vmem:[%s429_s1] sm:$0xff]   ;;  %s339_s1 = smov 96   ;;  %vm189_vm8 = vcmask 1044480   ;;  %v215_v55 = vshrl.u32 %v19_v10, 7 }
   0x4   :  { %309 = vmatpush3.bf16.msra.mxu0 %v84_v7  ;;  %vm217_vm9 = vcmp.lt.s32.totalorder %v388_v11, 16  ;;  %v342_v60 = vmov 13   ;;  %vm225_vm11 = vcmask 261120   ;;  %vm263_vm12 = vcmask 1041409  }
   0x5   :  { %310 = vmatprep.subr.bf16.mxu0 %v330_v6  ;;  %v216_v59 = vadd.s32 8, %v215_v55  ;;  %v218_v61 = vsel %vm217_vm9, 14, %v342_v60  ;;  %vm266_vm13 = vcmask 254976   ;;  %vm282_vm14 = vcmask 1024  }
   0x6   :  { %31 = vperm.xlu1 %328, %v18_v3   ;;  %25 = vperm.xlu0 %327, %v16_v4  }
   0x7   :  { %vm220_vm10 = vcmp.lt.s32.totalorder %v216_v59, %v218_v61 }
   0x8   :  { %311 = vmatpush3.bf16.msra.mxu0 %v330_v6 }
   0x9   :  { %312 = vmatprep.subr.bf16.mxu0 %v331_v8 }
   0xc   :  { %313 = vmatpush3.bf16.msra.mxu0 %v331_v8 }
   0xd   :  { %314 = vmatprep.subr.bf16.mxu0 %v332_v9 }
  0x10   :  { %315 = vmatpush3.bf16.msra.mxu0 %v332_v9 }
  0x7d   :  { %v29_v12 = vpop.permute.xlu1 %28  ;;  %v23_v13 = vpop.permute.xlu0 %22 }
  0x7e   :  { %vm35_vm1 = vcmp.eq.s32.totalorder %v29_v12, %v388_v11  ;;  %vm33_vm2 = vcmp.eq.s32.totalorder %v23_v13, %v388_v11 }
  0x7f   :  { %v290_v17 = vsel %vm35_vm1, 1.0, %v338_v16  ;;  %v288_v18 = vsel %vm33_vm2, 1.0, %v338_v16 }
  0x81   :  { %v32_v14 = vpop.permute.xlu1 %31  ;;  %v26_v15 = vpop.permute.xlu0 %25 }
  0x82   :  { %vm36_vm3 = vcmp.eq.s32.totalorder %v32_v14, %v388_v11  ;;  %vm34_vm4 = vcmp.eq.s32.totalorder %v26_v15, %v388_v11 }
  0x83   :  { %v291_v19 = vsel %vm36_vm3, 1.0, %v338_v16  ;;  %v289_v20 = vsel %vm34_vm4, 1.0, %v338_v16 }
  0x84   :  { %v46_v21 = vpack.c.bf16 %v291_v19, %v290_v17  ;;  %v45_v22 = vpack.c.bf16 %v289_v20, %v288_v18 }
  0x86   :  { %316 = vmatprep.mubr.msk.bf16.mxu0 %vm75_vm5, %v45_v22 }
  0x87   :  { %317 = vmatmul.mubr.msk.bf16.vlgmr.msra.gmra.mxu0 %vm75_vm5, %v46_v21 }
 0x147   :  { %v318_v23 = vpop.f32.mrf.mxu0 }
 0x148   :  { %v143_v28 = vrot.slane %v318_v23, 1  ;;  %v168_v37 = vrot.slane %v318_v23, 2  ;;  %v193_v45 = vrot.slane %v318_v23, 3 }
 0x149   :  { %v394_v24 = vpop.f32.mrf.mxu0 }
 0x14a   :  { %v140_v26 = vrot.slane %v394_v24, 1  ;;  %v165_v34 = vrot.slane %v394_v24, 2  ;;  %v190_v42 = vrot.slane %v394_v24, 3 }
 0x14b   :  { %v319_v25 = vpop.f32.mrf.mxu0 }
 0x14c   :  { %v145_v27 = vrot.slane %v319_v25, 1  ;;  %v170_v32 = vrot.slane %v319_v25, 2  ;;  %v195_v40 = vrot.slane %v319_v25, 3 }
 0x14d   :  { %v123_v29 = vpop.f32.mrf.mxu0 }
 0x14e   :  { %v141_v30 = vrot.slane %v123_v29, 1  ;;  %v147_v31 = vsel %vm139_vm6, %v145_v27, %v140_v26  ;;  %v146_v33 = vsel %vm139_vm6, %v143_v28, %v145_v27  ;;  %v172_v36 = vsel %vm164_vm7, %v170_v32, %v165_v34 }
 0x14f   :  { %154 = vrot.lane.b32.xlu0 %v147_v31, %s339_s1  ;;  %152 = vrot.lane.b32.xlu1 %v146_v33, %s339_s1  ;;  %v166_v38 = vrot.slane %v123_v29, 2  ;;  %v171_v41 = vsel %vm164_vm7, %v168_v37, %v170_v32  ;;  %v197_v44 = vsel %vm189_vm8, %v195_v40, %v190_v42  ;;  %v191_v46 = vrot.slane %v123_v29, 3  ;;  %v298_v31 = vld [vmem:[%s430_s2] ss:$0 sm:$0xff] }
 0x150   :  { %v144_v35 = vsel %vm139_vm6, %v141_v30, %v143_v28  ;;  %v142_v39 = vsel %vm139_vm6, %v140_v26, %v141_v30  ;;  %v196_v48 = vsel %vm189_vm8, %v193_v45, %v195_v40 }
 0x151   :  { %v169_v43 = vsel %vm164_vm7, %v166_v38, %v168_v37  ;;  %v167_v47 = vsel %vm164_vm7, %v165_v34, %v166_v38  ;;  %v194_v49 = vsel %vm189_vm8, %v191_v46, %v193_v45  ;;  %v192_v50 = vsel %vm189_vm8, %v190_v42, %v191_v46  ;;  %v300_v46 = vld [vmem:[%s430_s2 + $0x2] ss:$0 sm:$0xff] }
 0x153   :  { %150 = vrot.lane.b32.xlu0 %v144_v35, %s339_s1  ;;  %179 = vrot.lane.b32.xlu1 %v172_v36, %s340_s27  ;;  %v299_v36 = vld [vmem:[%s430_s2 + $0x1] ss:$0 sm:$0xff] }
 0x157   :  { %148 = vrot.lane.b32.xlu0 %v142_v39, %s339_s1  ;;  %177 = vrot.lane.b32.xlu1 %v171_v41, %s340_s27 }
 0x15b   :  { %175 = vrot.lane.b32.xlu0 %v169_v43, %s340_s27  ;;  %204 = vrot.lane.b32.xlu1 %v197_v44, %s341_s28 }
 0x15f   :  { %173 = vrot.lane.b32.xlu0 %v167_v47, %s340_s27  ;;  %202 = vrot.lane.b32.xlu1 %v196_v48, %s341_s28 }
 0x163   :  { %200 = vrot.lane.b32.xlu0 %v194_v49, %s341_s28  ;;  %198 = vrot.lane.b32.xlu1 %v192_v50, %s341_s28 }
 0x1c1   :  { %v155_v51 = vpop.permute.xlu0 %154  ;;  %v153_v52 = vpop.permute.xlu1 %152 }
 0x1c2   :  { %v163_v58 = vadd.f32 %v319_v25, %v155_v51  ;;  %v162_v1 = vadd.f32 %v318_v23, %v153_v52 }
 0x1c5   :  { %v151_v53 = vpop.permute.xlu0 %150  ;;  %v180_v54 = vpop.permute.xlu1 %179 }
 0x1c6   :  { %v188_v62 = vadd.f32 %v180_v54, %v163_v58  ;;  %v161_v5 = vadd.f32 %v151_v53, %v123_v29 }
 0x1c9   :  { %v149_v56 = vpop.permute.xlu0 %148  ;;  %v178_v57 = vpop.permute.xlu1 %177 }
 0x1ca   :  { %v187_v3 = vadd.f32 %v178_v57, %v162_v1  ;;  %v160_v8 = vadd.f32 %v149_v56, %v394_v24 }
 0x1cd   :  { %v176_v63 = vpop.permute.xlu0 %175  ;;  %v205_v0 = vpop.permute.xlu1 %204 }
 0x1ce   :  { %v213_v2 = vadd.f32 %v205_v0, %v188_v62  ;;  %v186_v10 = vadd.f32 %v176_v63, %v161_v5 }
 0x1d0   :  { %v224_v6 = vsel %vm220_vm10, %v213_v2, -inf }
 0x1d1   :  { %v174_v4 = vpop.permute.xlu0 %173  ;;  %v203_v7 = vpop.permute.xlu1 %202  ;;  %v236_v11 = vsel %vm225_vm11, %v224_v6, -inf }
 0x1d2   :  { %v212_v9 = vadd.f32 %v203_v7, %v187_v3  ;;  %v185_v13 = vadd.f32 %v174_v4, %v160_v8 }
 0x1d4   :  { %v235_v12 = vsel %vm225_vm11, %v212_v9, -inf }
 0x1d5   :  { %v201_v14 = vpop.permute.xlu0 %200  ;;  %v237_v15 = vmax.f32 %v235_v12, %v236_v11  ;;  %v199_v16 = vpop.permute.xlu1 %198 }
 0x1d6   :  { %v211_v17 = vadd.f32 %v201_v14, %v186_v10  ;;  %v210_v18 = vadd.f32 %v199_v16, %v185_v13 }
 0x1d7   :  { %v238_v19 = vrot.slane %v237_v15, 4 }
 0x1d8   :  { %v222_v20 = vsel %vm220_vm10, %v211_v17, -inf  ;;  %v226_v21 = vsel %vm225_vm11, %v210_v18, -inf }
 0x1d9   :  { %v227_v22 = vsel %vm225_vm11, %v222_v20, -inf  ;;  %v239_v23 = vmax.f32 %v237_v15, %v238_v19 }
 0x1da   :  { %v228_v24 = vmax.f32 %v226_v21, %v227_v22 }
 0x1db   :  { %v240_v25 = vrot.slane %v239_v23, 2 }
 0x1dc   :  { %v229_v26 = vrot.slane %v228_v24, 4 }
 0x1dd   :  { %v241_v27 = vmax.f32 %v239_v23, %v240_v25 }
 0x1de   :  { %v230_v28 = vmax.f32 %v228_v24, %v229_v26 }
 0x1df   :  { %v242_v29 = vrot.slane %v241_v27, 1 }
 0x1e0   :  { %v231_v30 = vrot.slane %v230_v28, 2 }
 0x1e1   :  { %v243_v32 = vmax.f32 %v241_v27, %v242_v29 }
 0x1e2   :  { %v232_v33 = vmax.f32 %v230_v28, %v231_v30 }
 0x1e3   :  { %v250_v35 = vadd.f32 %v298_v31, %v243_v32 }
 0x1e4   :  { %v233_v34 = vrot.slane %v232_v33, 1 }
 0x1e5   :  { %v252_v38 = vmax.f32 %v250_v35, 0.0 }
 0x1e6   :  { %v234_v37 = vmax.f32 %v232_v33, %v233_v34 }
 0x1e7   :  { %v259_v40 = vmul.f32 %v299_v36, %v252_v38 }
 0x1e8   :  { %v249_v39 = vadd.f32 %v298_v31, %v234_v37 }
 0x1e9   :  { %v262_v43 = vrot.slane %v259_v40, 7 }
 0x1ea   :  { %v251_v41 = vmax.f32 %v249_v39, 0.0 }
 0x1ec   :  { %v258_v42 = vmul.f32 %v299_v36, %v251_v41 }
 0x1ee   :  { %v264_v44 = vsel %vm263_vm12, %v262_v43, %v258_v42 }
 0x1ef   :  { %v267_v45 = vsel %vm266_vm13, %v264_v44, 0.0 }
 0x1f0   :  { %268 = vadd.xlane.f32.xlu0 %v267_v45 }
 0x279   :  { %v269_v47 = vpop.xlane.xlu0 %268 }
 0x27a   :  { %v275_v48 = vadd.f32 %v300_v46, %v269_v47 }
 0x27c   :  { %v301_v49 = vmul.f32 -1.442695, %v275_v48 }
 0x27e   :  { %333 = vpow2.f32 %v301_v49 }
 0x28b   :  { %v334_v50 = vpop.eup %333 }
 0x28c   :  { %v279_v51 = vadd.f32 1.0, %v334_v50 }
 0x28e   :  { %335 = vrcp.f32 %v279_v51 }
 0x29b   :  { %v336_v52 = vpop.eup %335 }
 0x29c   :  { %283 = vst.msk [vmem:[%s431_s3] sm:$0x3] %vm282_vm14, %v336_v52 }

</bundles_post_ra>
